<compile_context>
chip_gen: v7x
topology: tpu7x:2x2x1
jax: 0.10.0
libtpu: 0.0.40
codegen_flags: <defaults>
</compile_context>

<pallas_src>
import functools

import jax
import jax.numpy as jnp
from jax import lax
from jax.experimental import pallas as pl
from jax.experimental.pallas import tpu as pltpu

_DEFAULT_VMEM_BYTES = 64 * 1024 * 1024   # conservative fallback (v7x per-core)


def _round_up(x, m):
    return -(-x // m) * m


def _sublane_multiple(dtype) -> int:
    # Second-minor block alignment for f32 / bf16 / int8-class dtypes.
    return {4: 8, 2: 16, 1: 32}.get(jnp.dtype(dtype).itemsize, 8)


def _tpu_vmem_bytes() -> int:
    try:
        v = getattr(pltpu.get_tpu_info(), "vmem_capacity_bytes", None)
        if v:
            return int(v)
    except Exception:
        pass
    return _DEFAULT_VMEM_BYTES


def _tpu_num_cores() -> int:
    """TensorCores sharing this kernel (v7x: 2, v5e/v6e: 1)."""
    try:
        info = pltpu.get_tpu_info()
        for name in ("num_cores", "core_count", "num_tensorcores",
                     "tensorcores_per_chip", "num_tensor_cores"):
            v = getattr(info, name, None)
            if isinstance(v, int) and v >= 1:
                return v
    except Exception:
        pass
    try:
        if "v7" in jax.devices()[0].device_kind.lower():
            return 2
    except Exception:
        pass
    return 1


def _make_kernel(*, bk, tr, nb, s_inner, needs_mask, w_mode):
    acc8 = (tr % 8 == 0)

    def kernel(pred_ref, gt_ref, w_ref, out_ref, acc_ref):
        c = pl.program_id(0)
        i = pl.program_id(1)

        @pl.when(i == 0)
        def _init():
            acc_ref[...] = jnp.zeros_like(acc_ref)

        p = pred_ref[...].astype(jnp.float32)
        g = gt_ref[...].astype(jnp.float32)

        if w_mode == "row_resident":
            # Resident (nb, tr, 1) weight: slice out the current block's rows.
            blk = jnp.minimum(c * s_inner + i, nb - 1)
            w = w_ref[blk].astype(jnp.float32)           # (tr, 1) -> broadcasts
        else:
            w = w_ref[...].astype(jnp.float32)           # (tr, hw) or (tr, 1)

        d = (p - g) * w
        dd = d * d

        if needs_mask:
            # Zero rows past the end of the (bk, hw) matrix (partial trailing
            # block / clamped duplicate block).  Padded rows may hold NaN/Inf,
            # so use a select rather than a multiply.  Uses the *unclamped*
            # block index so a duplicated clamped block contributes nothing.
            row0 = (c * s_inner + i) * tr
            rows = lax.broadcasted_iota(jnp.int32, (dd.shape[0], 1), 0) + row0
            dd = jnp.where(rows < bk, dd, 0.0)

        # Per-step work is pure VPU adds; the cross-sublane reduce is deferred
        # to the finalize step.
        if acc8:
            if tr == 8:
                acc_ref[...] += dd
            else:
                acc_ref[...] += dd.reshape(tr // 8, 8, dd.shape[-1]).sum(axis=0)
        else:
            acc_ref[...] += jnp.sum(dd, axis=0, keepdims=True)

        @pl.when(i == pl.num_programs(1) - 1)
        def _finalize():
            out_ref[0] = jnp.sum(acc_ref[...], axis=0, keepdims=True)

    return kernel


@functools.partial(jax.jit, static_argnames=("target_tile_bytes", "num_cores"))
def mse_loss(pred_hm, gt_hm, gt_hm_weight, *, target_tile_bytes=None,
             num_cores=None):
    """0.5 * mean((pred*w - gt*w)^2), matching rlepose MSELoss.forward."""
    assert pred_hm.shape == gt_hm.shape
    shape = pred_hm.shape
    n = pred_hm.size
    itemsize = jnp.dtype(pred_hm.dtype).itemsize

    # --- lane-dense 2-D view: rows = leading dims (B*K), cols = spatial ------
    hw = shape[-1] * shape[-2] if pred_hm.ndim >= 2 else shape[-1]
    bk = n // hw

    # --- weight dispatch (by shape, not size) ---------------------------------
    w_shape = gt_hm_weight.shape
    if w_shape == shape:
        w_mode = "full"
    elif (pred_hm.ndim >= 2 and gt_hm_weight.ndim == pred_hm.ndim
          and all(s == 1 for s in w_shape[-2:]) and w_shape[:-2] == shape[:-2]):
        w_mode = "row"                  # per-(B, K) weight, broadcast over H, W
    else:
        # TODO(synk): odd broadcast patterns fall back to a materialized
        # full-size weight (extra HBM traffic, still correct).
        gt_hm_weight = jnp.broadcast_to(gt_hm_weight, shape)
        w_mode = "full"

    # --- fold rows into lanes when the spatial size is not lane-dense --------
    if hw % 128 != 0 and w_mode == "full" and n % 128 == 0:
        lane_w = 128
        while n % (2 * lane_w) == 0 and 2 * lane_w <= 2048:
            lane_w *= 2
        hw, bk = lane_w, n // lane_w
    # TODO(synk): compact-weight inputs with hw % 128 != 0 keep partially
    # masked lanes (still correct, just lower effective load bandwidth).

    pred2 = pred_hm.reshape(bk, hw)
    gt2 = gt_hm.reshape(bk, hw)

    # --- generation-aware tile sizing -----------------------------------------
    vmem_cap = _tpu_vmem_bytes()
    if target_tile_bytes is None:
        # ~4 MiB/stream amortizes the ~0.35 us/step overhead; 2 MiB on very
        # small-VMEM parts.
        target_tile_bytes = (4 << 20) if vmem_cap >= (48 << 20) else (2 << 20)

    sub = _sublane_multiple(pred_hm.dtype)
    if w_mode == "full":
        sub = max(sub, _sublane_multiple(gt_hm_weight.dtype))
    padded_hw = _round_up(hw, 128)                 # lanes pad to 128 in VMEM
    row_bytes = padded_hw * itemsize
    if bk <= sub:
        tr = bk                                    # full extent: always legal
    else:
        tr = (target_tile_bytes // max(1, row_bytes)) // sub * sub
        tr = max(sub, min(tr, bk))
    nb = -(-bk // tr)                              # number of row blocks

    # --- split across TensorCores only when the chip really has more than 1 --
    cores = _tpu_num_cores() if num_cores is None else num_cores
    nc = 2 if (cores >= 2 and nb >= 2) else 1
    if nc == 2 and nb % nc != 0 and tr > sub:
        # Prefer a block size whose block count splits evenly across cores
        # (avoids the clamped duplicate-block re-read); only shrink a little.
        for cand in range(tr - sub, max(sub, tr // 2) - 1, -sub):
            if (-(-bk // cand)) % nc == 0:
                tr, nb = cand, -(-bk // cand)
                break
    s_inner = -(-nb // nc)
    needs_mask = (bk % tr != 0) or (nc * s_inner != nb)

    def row_idx(c, i):
        idx = c * s_inner + i
        if nc * s_inner != nb:
            # Never DMA a fully out-of-bounds block; the in-kernel row mask
            # (computed from the *unclamped* index) zeroes its contribution.
            idx = jnp.minimum(idx, nb - 1)
        return idx

    data_spec = pl.BlockSpec((tr, hw), lambda c, i: (row_idx(c, i), 0))

    # --- weight operand --------------------------------------------------------
    if w_mode == "full":
        w_arr = gt_hm_weight.reshape(bk, hw)
        w_spec = pl.BlockSpec((tr, hw), lambda c, i: (row_idx(c, i), 0))
    else:
        w_flat = gt_hm_weight.reshape(bk).astype(jnp.float32)
        resident_bytes = nb * _round_up(tr, 8) * 128 * 4
        if resident_bytes <= (2 << 20):
            # Resident weight: constant block index -> fetched once, never
            # re-DMA'd, removing one DMA issue per grid step.
            w_mode = "row_resident"
            pad = nb * tr - bk
            if pad:
                w_flat = jnp.pad(w_flat, (0, pad))
            w_arr = w_flat.reshape(nb, tr, 1)
            w_spec = pl.BlockSpec((nb, tr, 1), lambda c, i: (0, 0, 0))
        else:
            w_mode = "row_stream"
            w_arr = w_flat.reshape(bk, 1)
            w_spec = pl.BlockSpec((tr, 1), lambda c, i: (row_idx(c, i), 0))

    acc_rows = 8 if tr % 8 == 0 else 1

    # --- explicit VMEM budget (double-buffered streams + resident state) ------
    blk_bytes = tr * padded_hw * itemsize
    if w_mode == "full":
        w_vmem = 2 * tr * padded_hw * jnp.dtype(gt_hm_weight.dtype).itemsize
    elif w_mode == "row_stream":
        w_vmem = 2 * _round_up(tr, 8) * 128 * 4
    else:
        w_vmem = nb * _round_up(tr, 8) * 128 * 4
    need = (2 * 2 * blk_bytes + w_vmem
            + _round_up(acc_rows, 8) * padded_hw * 4 + 2 * 8 * padded_hw * 4)
    vmem_limit = int(min(max(2 * need + (4 << 20), 16 << 20), vmem_cap))

    if nc == 2:
        dims = (pltpu.CORE_PARALLEL, pltpu.ARBITRARY)
    else:
        dims = ("arbitrary", "arbitrary")

    cost = pl.CostEstimate(
        flops=4 * n,
        transcendentals=0,
        bytes_accessed=(2 * n * itemsize
                        + w_arr.size * jnp.dtype(w_arr.dtype).itemsize
                        + nc * hw * 4))

    partials = pl.pallas_call(
        _make_kernel(bk=bk, tr=tr, nb=nb, s_inner=s_inner,
                     needs_mask=needs_mask, w_mode=w_mode),
        out_shape=jax.ShapeDtypeStruct((nc, 1, hw), jnp.float32),
        grid_spec=pltpu.PrefetchScalarGridSpec(
            num_scalar_prefetch=0,
            grid=(nc, s_inner),
            in_specs=[data_spec, data_spec, w_spec],
            out_specs=pl.BlockSpec((1, 1, hw), lambda c, i: (c, 0, 0)),
            scratch_shapes=[pltpu.VMEM((acc_rows, hw), jnp.float32)],
        ),
        compiler_params=pltpu.CompilerParams(
            dimension_semantics=dims, vmem_limit_bytes=vmem_limit),
        cost_estimate=cost,
    )(pred2, gt2, w_arr)

    # TODO(synk): no lane-axis tiling — an extremely large H*W could exceed
    # VMEM even at 8 rows per block; typical heatmap sizes are far below that.
    return jnp.sum(partials) * (0.5 / n)


if __name__ == "__main__":
    key = jax.random.PRNGKey(0)
    k1, k2, k3 = jax.random.split(key, 3)

    # (B, K, H, W) = (2, 4, 16, 16) with per-joint (B, K, 1, 1) visibility
    # weights — exactly the tensors rlepose's MSELoss sees.
    B, K, H, W = 2, 4, 16, 16
    pred_hm = jax.random.normal(k1, (B, K, H, W), dtype=jnp.float32)
    gt_hm = jax.random.normal(k2, (B, K, H, W), dtype=jnp.float32)
    gt_hm_weight = (jax.random.uniform(k3, (B, K, 1, 1)) > 0.2).astype(jnp.float32)

    ref = 0.5 * jnp.mean((pred_hm * gt_hm_weight - gt_hm * gt_hm_weight) ** 2)

    # 1) compact per-joint weight (resident-weight path)
    loss = mse_loss(pred_hm, gt_hm, gt_hm_weight)
    jax.block_until_ready(loss)
    assert jnp.allclose(loss, ref, rtol=1e-5, atol=1e-6), (loss, ref)

    # 2) pre-broadcast full-size weight (streamed-weight path)
    w_full = jnp.broadcast_to(gt_hm_weight, (B, K, H, W))
    loss_full = mse_loss(pred_hm, gt_hm, w_full)
    jax.block_until_ready(loss_full)
    assert jnp.allclose(loss_full, ref, rtol=1e-5, atol=1e-6), (loss_full, ref)

    # 3) multi-block path: several row blocks + a masked partial trailing block
    #    (small tile target keeps the test data small).
    B2, K2, H2, W2 = 2, 18, 32, 32
    p2 = jax.random.normal(k1, (B2, K2, H2, W2), dtype=jnp.float32)
    g2 = jax.random.normal(k2, (B2, K2, H2, W2), dtype=jnp.float32)
    w2 = (jax.random.uniform(k3, (B2, K2, 1, 1)) > 0.2).astype(jnp.float32)
    ref2 = 0.5 * jnp.mean((p2 * w2 - g2 * w2) ** 2)
    loss2 = mse_loss(p2, g2, w2, target_tile_bytes=32 * 1024)
    jax.block_until_ready(loss2)
    assert jnp.allclose(loss2, ref2, rtol=1e-5, atol=1e-6), (loss2, ref2)

    # 3b) same data, larger blocks: exercises the multi-sublane-group (8, hw)
    #     accumulation path (tr > 8) together with the row mask.
    loss2b = mse_loss(p2, g2, w2, target_tile_bytes=96 * 1024)
    jax.block_until_ready(loss2b)
    assert jnp.allclose(loss2b, ref2, rtol=1e-5, atol=1e-6), (loss2b, ref2)

    # 4) non-lane-dense spatial size (12x12) with a full-size weight:
    #    lane-fold path to a 128-wide slab.
    B3, K3, H3, W3 = 2, 4, 12, 12
    p3 = jax.random.normal(k1, (B3, K3, H3, W3), dtype=jnp.float32)
    g3 = jax.random.normal(k2, (B3, K3, H3, W3), dtype=jnp.float32)
    w3 = jnp.broadcast_to(
        (jax.random.uniform(k3, (B3, K3, 1, 1)) > 0.2).astype(jnp.float32),
        (B3, K3, H3, W3))
    ref3 = 0.5 * jnp.mean((p3 * w3 - g3 * w3) ** 2)
    loss3 = mse_loss(p3, g3, w3)
    jax.block_until_ready(loss3)
    assert jnp.allclose(loss3, ref3, rtol=1e-5, atol=1e-6), (loss3, ref3)

    print("KERNEL_OK")
</pallas_src>

<mosaic_0001>
module attributes {stable_mosaic.version = 11 : i64} {
  func.func @kernel(%arg0: i32, %arg1: i32, %arg2: memref<8x256xf32, #tpu.memory_space<vmem>>, %arg3: memref<8x256xf32, #tpu.memory_space<vmem>>, %arg4: memref<1x8x1xf32, #tpu.memory_space<vmem>>, %arg5: memref<1x1x256xf32, #tpu.memory_space<vmem>>, %arg6: memref<8x256xf32, #tpu.memory_space<vmem>>) attributes {dimension_semantics = [#tpu.dimension_semantics<arbitrary>, #tpu.dimension_semantics<arbitrary>], iteration_bounds = array<i64: 1, 1>, scalar_prefetch = 0 : i64, scratch_operands = 1 : i64, tpu.core_type = #tpu.core_type<tc>, window_params = [{transform_indices = @transform_0, window_bounds = array<i64: 8, 256>}, {transform_indices = @transform_1, window_bounds = array<i64: 8, 256>}, {pipeline_mode = #tpu.pipeline_mode<synchronous>, transform_indices = @transform_2, window_bounds = array<i64: 1, 8, 1>}, {transform_indices = @transform_3, window_bounds = array<i64: 1, 1, 256>}]} {
    %c0_i32 = arith.constant 0 : i32
    %0 = arith.cmpi eq, %arg1, %c0_i32 : i32
    %1 = arith.extui %0 : i1 to i32
    %c0_i32_0 = arith.constant 0 : i32
    %2 = arith.cmpi ne, %1, %c0_i32_0 : i32
    scf.if %2 {
      %cst = arith.constant 0.000000e+00 : f32
      %21 = vector.broadcast %cst : f32 to vector<8x256xf32>
      %c0_13 = arith.constant 0 : index
      %c0_14 = arith.constant 0 : index
      %22 = vector.load %arg6[%c0_13, %c0_14] : memref<8x256xf32, #tpu.memory_space<vmem>>, vector<8x256xf32>
      tpu.vector_store %arg6[%c0_13, %c0_14], %21 {strides = array<i32>} : memref<8x256xf32, #tpu.memory_space<vmem>>, vector<8x256xf32>,
    } else {
    }
    %c0 = arith.constant 0 : index
    %c0_1 = arith.constant 0 : index
    %3 = vector.load %arg2[%c0, %c0_1] : memref<8x256xf32, #tpu.memory_space<vmem>>, vector<8x256xf32>
    %c0_2 = arith.constant 0 : index
    %c0_3 = arith.constant 0 : index
    %4 = vector.load %arg3[%c0_2, %c0_3] : memref<8x256xf32, #tpu.memory_space<vmem>>, vector<8x256xf32>
    %c1_i32 = arith.constant 1 : i32
    %5 = arith.muli %arg0, %c1_i32 : i32
    %6 = arith.addi %5, %arg1 : i32
    %c0_i32_4 = arith.constant 0 : i32
    %7 = arith.minsi %6, %c0_i32_4 : i32
    %8 = arith.index_cast %7 : i32 to index
    %c0_5 = arith.constant 0 : index
    %c0_6 = arith.constant 0 : index
    %9 = vector.load %arg4[%8, %c0_5, %c0_6] : memref<1x8x1xf32, #tpu.memory_space<vmem>>, vector<1x8x1xf32>
    %10 = vector.shape_cast %9 : vector<1x8x1xf32> to vector<8x1xf32>
    %11 = arith.subf %3, %4 : vector<8x256xf32>
    %12 = vector.broadcast %10 : vector<8x1xf32> to vector<8x256xf32>
    %13 = arith.mulf %11, %12 : vector<8x256xf32>
    %14 = arith.mulf %13, %13 : vector<8x256xf32>
    %c0_7 = arith.constant 0 : index
    %c0_8 = arith.constant 0 : index
    %15 = vector.load %arg6[%c0_7, %c0_8] : memref<8x256xf32, #tpu.memory_space<vmem>>, vector<8x256xf32>
    %16 = arith.addf %15, %14 : vector<8x256xf32>
    %c0_9 = arith.constant 0 : index
    %c0_10 = arith.constant 0 : index
    %17 = vector.load %arg6[%c0_9, %c0_10] : memref<8x256xf32, #tpu.memory_space<vmem>>, vector<8x256xf32>
    tpu.vector_store %arg6[%c0_9, %c0_10], %16 {strides = array<i32>} : memref<8x256xf32, #tpu.memory_space<vmem>>, vector<8x256xf32>,
    %c0_i32_11 = arith.constant 0 : i32
    %18 = arith.cmpi eq, %arg1, %c0_i32_11 : i32
    %19 = arith.extui %18 : i1 to i32
    %c0_i32_12 = arith.constant 0 : i32
    %20 = arith.cmpi ne, %19, %c0_i32_12 : i32
    scf.if %20 {
      %c0_13 = arith.constant 0 : index
      %c0_14 = arith.constant 0 : index
      %21 = vector.load %arg6[%c0_13, %c0_14] : memref<8x256xf32, #tpu.memory_space<vmem>>, vector<8x256xf32>
      %cst = arith.constant dense<0.000000e+00> : vector<256xf32>
      %22 = vector.multi_reduction <add>, %21, %cst [0] : vector<8x256xf32> to vector<256xf32>
      %23 = vector.shape_cast %22 : vector<256xf32> to vector<1x256xf32>
      %c0_15 = arith.constant 0 : index
      %c0_16 = arith.constant 0 : index
      %c0_17 = arith.constant 0 : index
      %24 = vector.load %arg5[%c0_15, %c0_16, %c0_17] : memref<1x1x256xf32, #tpu.memory_space<vmem>>, vector<1x1x256xf32>
      %25 = vector.shape_cast %24 : vector<1x1x256xf32> to vector<1x256xf32>
      %26 = vector.shape_cast %23 : vector<1x256xf32> to vector<1x1x256xf32>
      tpu.vector_store %arg5[%c0_15, %c0_16, %c0_17], %26 {strides = array<i32>} : memref<1x1x256xf32, #tpu.memory_space<vmem>>, vector<1x1x256xf32>,
    } else {
    }
    return
  }
  func.func @transform_0(%arg0: i32, %arg1: i32) -> (i32, i32) {
    %c1_i32 = arith.constant 1 : i32
    %0 = arith.muli %arg0, %c1_i32 : i32
    %1 = arith.addi %0, %arg1 : i32
    %c0_i32 = arith.constant 0 : i32
    %c0_i32_0 = arith.constant 0 : i32
    return %1, %c0_i32 : i32, i32
  }
  func.func @transform_1(%arg0: i32, %arg1: i32) -> (i32, i32) {
    %c1_i32 = arith.constant 1 : i32
    %0 = arith.muli %arg0, %c1_i32 : i32
    %1 = arith.addi %0, %arg1 : i32
    %c0_i32 = arith.constant 0 : i32
    %c0_i32_0 = arith.constant 0 : i32
    return %1, %c0_i32 : i32, i32
  }
  func.func @transform_2(%arg0: i32, %arg1: i32) -> (i32, i32, i32) {
    %c0_i32 = arith.constant 0 : i32
    %c0_i32_0 = arith.constant 0 : i32
    %c0_i32_1 = arith.constant 0 : i32
    %c0_i32_2 = arith.constant 0 : i32
    return %c0_i32, %c0_i32_0, %c0_i32_1 : i32, i32, i32
  }
  func.func @transform_3(%arg0: i32, %arg1: i32) -> (i32, i32, i32) {
    %c0_i32 = arith.constant 0 : i32
    %c0_i32_0 = arith.constant 0 : i32
    %c0_i32_1 = arith.constant 0 : i32
    return %arg0, %c0_i32, %c0_i32_0 : i32, i32, i32
  }
}

</mosaic_0001>

<bundles_post_ra>
// kernel: mse_loss.1
= control target key start
LH: loop header
LB: loop body
LE: loop exit
PB: predicated region body
PF: predicated region fallthrough
CT: control target
= control target key end

     0   :  { %v148_v0 = vmov 0   ;;  %v149_v15 = vmov 1966171168   ;;  %v110_v17 = vlaneseq  ;;  %s188_s2 = inlined_call_operand.vmem [shape: f32[1,8,1], index: 2, kind: input, shape index: {}]   ;;  %s189_s0 = inlined_call_operand.vmem [shape: f32[8,256], index: 0, kind: input, shape index: {}]   ;;  %s190_s1 = inlined_call_operand.vmem [shape: f32[8,256], index: 1, kind: input, shape index: {}]   ;;  %s191_s3 = inlined_call_operand.vmem [shape: f32[1,1,256], index: 3, kind: output, shape index: {}]  }
   0x1   :  { %147 = vset.pattern.permute.xlu0 %v148_v0  ;;  %v69_v1 = vld [vmem:[%s188_s2] sm:$0xff]  ;;  %v61_v3 = vld [vmem:[%s189_s0 + $0x8] sm:$0xff]  ;;  %v108_v16 = vunpack.c.l.s4 %v149_v15 }
   0x2   :  { %74 = vperm.xlu0 %147, %v69_v1   ;;  %v60_v2 = vld [vmem:[%s189_s0] sm:$0xff]  ;;  %v63_v5 = vld [vmem:[%s190_s1 + $0x8] sm:$0xff]  ;;  %v111_v23 = vshrl.u32 %v110_v17, 7  ;;  %vm124_vm0 = vcmp.lt.s32.totalorder %v110_v17, 256 }
   0x3   :  { %v62_v4 = vld [vmem:[%s190_s1] sm:$0xff]  ;;  %v71_v7 = vsub.f32 %v61_v3, %v63_v5  ;;  %v109_v22 = vunpack.c.0.s8 %v108_v16 }
   0x4   :  { %v70_v6 = vsub.f32 %v60_v2, %v62_v4 }
   0x5   :  { %v112_v28 = vsub.s32 %v109_v22, %v111_v23 }
  0x81   :  { %v75_v8 = vpop.permute.xlu0 %74 }
  0x82   :  { %v77_v9 = vmul.f32 %v75_v8, %v70_v6  ;;  %v78_v10 = vmul.f32 %v75_v8, %v71_v7 }
  0x84   :  { %v79_v11 = vmul.f32 %v77_v9, %v77_v9  ;;  %v80_v12 = vmul.f32 %v78_v10, %v78_v10 }
  0x86   :  { %v92_v13 = vrot.slane %v79_v11, 4  ;;  %v98_v14 = vrot.slane %v80_v12, 4 }
  0x88   :  { %v93_v18 = vadd.f32 %v92_v13, %v79_v11  ;;  %v99_v19 = vadd.f32 %v98_v14, %v80_v12 }
  0x8a   :  { %v94_v20 = vrot.slane %v93_v18, 2  ;;  %v100_v21 = vrot.slane %v99_v19, 2 }
  0x8c   :  { %v95_v24 = vadd.f32 %v94_v20, %v93_v18  ;;  %v101_v25 = vadd.f32 %v100_v21, %v99_v19 }
  0x8e   :  { %v96_v26 = vrot.slane %v95_v24, 1  ;;  %v102_v27 = vrot.slane %v101_v25, 1 }
  0x90   :  { %v97_v29 = vadd.f32 %v96_v26, %v95_v24  ;;  %v103_v30 = vadd.f32 %v102_v27, %v101_v25 }
  0x92   :  { %v106_v31 = vcombine.low %v97_v29, %v103_v30 }
  0x94   :  { %v113_v32 = vrot.slane %v106_v31, %v112_v28 }
  0x96   :  { %v120_v33 = vrot.slane %v113_v32, %v112_v28 }
  0x98   :  { %126 = vst.msk [vmem:[%s191_s3] sm:$0x3] %vm124_vm0, %v120_v33 }

</bundles_post_ra>
